<compile_context>
chip_gen: v5e
topology: v5e:2x2
jax: 0.10.0
libtpu: 0.0.40
codegen_flags: <defaults>
</compile_context>

<pallas_src>
import jax
import jax.numpy as jnp
import numpy as np
from jax.experimental import pallas as pl
from jax.experimental.pallas import tpu as pltpu

# ----------------------------- module constants -----------------------------

C0, H0, W0 = 3, 32, 32
OC1, KH1, KW1, S1 = 6, 3, 3, 1
OC2, KH2, KW2, S2 = 3, 4, 4, 2
OH1, OW1 = (H0 - KH1) // S1 + 1, (W0 - KW1) // S1 + 1          # 30, 30
OH2, OW2 = (OH1 - KH2) // S2 + 1, (OW1 - KW2) // S2 + 1        # 14, 14
NOUT = 10

PLW = 16                      # parity-plane width/height (32 / 2)
LPI = PLW * PLW               # lanes per image = 256
NPAD_OUT = 128                # lane-dense padded output width
SHIFT_OFFS = (0, 1, PLW, PLW + 1)   # shift index s=(da,db) -> da*16 + db


# ------------------------------- Pallas kernel -------------------------------

def _cnn_kernel(xp_ref, w1_ref, w2_ref, w3_ref, b_ref, out_ref):
    # xp_ref : (12, NB*256)   parity-plane packed input block, rows = (pa,qa,c)
    # w1_ref : (4, 24, 12)    conv1 weights per shift, out rows = (p,q,oc1)
    # w2_ref : (4, 3, 24)     conv2 weights per shift
    # w3_ref : (3, 256, 128)  linear weights per conv2 channel, lane-dense
    # b_ref  : (1, 128)       padded bias
    # out_ref: (1, NB, 128)
    x = xp_ref[...]
    lanes = x.shape[-1]
    nb = out_ref.shape[1]

    def shifted(v, off):
        # result[:, i] = v[:, (i + off) % lanes].  Cross-image / wrap-around
        # lanes only land in spatial padding positions (row/col 15 of each
        # 16x16 plane) that are never read downstream.
        return v if off == 0 else pltpu.roll(v, lanes - off, 1)

    # conv1 + tanh: one output row per (parity p, parity q, out-channel).
    acc1 = jnp.dot(w1_ref[0], x, preferred_element_type=jnp.float32)
    for s in range(1, 4):
        acc1 = acc1 + jnp.dot(w1_ref[s], shifted(x, SHIFT_OFFS[s]),
                              preferred_element_type=jnp.float32)
    a1 = jnp.tanh(acc1)                                          # (24, NB*256)

    # conv2 + tanh: stride 2 == pick a parity plane; 4 shifts of one
    # plane-row / plane-column cover the 4x4 taps.
    acc2 = jnp.dot(w2_ref[0], a1, preferred_element_type=jnp.float32)
    for t in range(1, 4):
        acc2 = acc2 + jnp.dot(w2_ref[t], shifted(a1, SHIFT_OFFS[t]),
                              preferred_element_type=jnp.float32)
    a2 = jnp.tanh(acc2)                                          # (3, NB*256)

    # linear + bias + sigmoid, batched over the image block, dense store.
    a2r = a2.reshape(OC2, nb, LPI)                               # [c, image, lane]
    acc = b_ref[...]                                             # (1,128) broadcasts
    for c in range(OC2):
        acc = acc + jnp.dot(a2r[c], w3_ref[c],
                            preferred_element_type=jnp.float32)  # (NB, 128)
    out_ref[0] = 1.0 / (1.0 + jnp.exp(-acc))


# ---------------------------- host-side preparation --------------------------

def prepare_params(params):
    """Pack weights once (host side, outside the per-call path)."""
    w1 = np.asarray(jax.device_get(params["w1"]), np.float32)   # (6,3,3,3)
    w2 = np.asarray(jax.device_get(params["w2"]), np.float32)   # (3,6,4,4)
    w3 = np.asarray(jax.device_get(params["w3"]), np.float32)   # (10,588)
    b3 = np.asarray(jax.device_get(params["b3"]), np.float32)   # (10,)

    # conv1: output row r1 = (p*2+q)*6 + oc1, input row r_in = (pa*2+qa)*3 + c,
    # shift s = da*2 + db.  Tap (a,b) of conv1 at output parity (p,q) reads
    # input parity ((p+a)%2,(q+b)%2) shifted by ((p+a)//2,(q+b)//2).
    w1s = np.zeros((4, 4 * OC1, 4 * C0), np.float32)            # (4, 24, 12)
    for da in range(2):
        for db in range(2):
            s = da * 2 + db
            for p in range(2):
                for q in range(2):
                    for pa in range(2):
                        a = 2 * da + pa - p
                        if not 0 <= a < KH1:
                            continue
                        for qa in range(2):
                            b = 2 * db + qa - q
                            if not 0 <= b < KW1:
                                continue
                            for oc1 in range(OC1):
                                for c in range(C0):
                                    w1s[s, (p * 2 + q) * OC1 + oc1,
                                        (pa * 2 + qa) * C0 + c] = w1[oc1, c, a, b]

    # conv2: tap (ki,kj) == conv1-output parity (ki%2, kj%2), shifted by
    # (ki//2, kj//2).  Column order matches a1's row order (p,q,oc1).
    w2s = np.zeros((4, OC2, 4 * OC1), np.float32)                # (4, 3, 24)
    for di in range(2):
        for dj in range(2):
            t = di * 2 + dj
            for p in range(2):
                for q in range(2):
                    for oc2 in range(OC2):
                        for oc1 in range(OC1):
                            w2s[t, oc2, (p * 2 + q) * OC1 + oc1] = \
                                w2[oc2, oc1, 2 * di + p, 2 * dj + q]

    # linear: PyTorch flatten order oc2*196 + oi*14 + oj; scatter the 14x14
    # grid into the kernel's 16x16 lane grid and pad outputs 10 -> 128.
    w3r = w3.reshape(NOUT, OC2, OH2, OW2).transpose(1, 2, 3, 0)  # (3,14,14,10)
    w3p = np.zeros((OC2, PLW, PLW, NPAD_OUT), np.float32)
    w3p[:, :OH2, :OW2, :NOUT] = w3r
    w3p = w3p.reshape(OC2, LPI, NPAD_OUT)                        # (3,256,128)

    bias = np.zeros((1, NPAD_OUT), np.float32)
    bias[0, :NOUT] = b3

    return {"w1": jnp.asarray(w1s), "w2": jnp.asarray(w2s),
            "w3": jnp.asarray(w3p), "b": jnp.asarray(bias)}


def _pick_block(n):
    """Images per grid step: small chunks, >= 2 grid steps when possible."""
    for nb in (8, 4, 2):
        if n % nb == 0 and n // nb >= 2:
            return nb
    return 1


def _pack_input(x):
    """(N,3,32,32) -> (12, N*256) space-to-depth (parity-plane) layout.

    row = (pa*2 + qa)*3 + c, lane = n*256 + I*16 + J,
    value = x[n, c, 2*I + pa, 2*J + qa].  Same bytes as the raw input.
    """
    n = x.shape[0]
    xr = x.astype(jnp.float32).reshape(n, C0, PLW, 2, PLW, 2)    # (n,c,I,pa,J,qa)
    xp = jnp.transpose(xr, (3, 5, 1, 0, 2, 4))                   # (pa,qa,c,n,I,J)
    return xp.reshape(4 * C0, n * LPI)


@jax.jit
def _forward(x, w1, w2, w3, b):
    n = x.shape[0]
    nb = _pick_block(n)
    npad = ((n + nb - 1) // nb) * nb
    if npad != n:
        x = jnp.pad(x, ((0, npad - n), (0, 0), (0, 0), (0, 0)))
    xp = _pack_input(x)                                          # (12, npad*256)
    g = npad // nb

    out = pl.pallas_call(
        _cnn_kernel,
        out_shape=jax.ShapeDtypeStruct((g, nb, NPAD_OUT), jnp.float32),
        grid=(g,),
        in_specs=[
            pl.BlockSpec((4 * C0, nb * LPI), lambda i: (0, i)),
            pl.BlockSpec((4, 4 * OC1, 4 * C0), lambda i: (0, 0, 0)),
            pl.BlockSpec((4, OC2, 4 * OC1), lambda i: (0, 0, 0)),
            pl.BlockSpec((OC2, LPI, NPAD_OUT), lambda i: (0, 0, 0)),
            pl.BlockSpec((1, NPAD_OUT), lambda i: (0, 0)),
        ],
        out_specs=pl.BlockSpec((1, nb, NPAD_OUT), lambda i: (i, 0, 0)),
        compiler_params=pltpu.CompilerParams(
            dimension_semantics=("parallel",)),
    )(xp, w1, w2, w3, b)

    return out.reshape(npad, NPAD_OUT)[:n, :NOUT]


def cnn3_c13_forward(x, packed):
    n = x.shape[0]
    out = _forward(x, packed["w1"], packed["w2"], packed["w3"], packed["b"])
    # Mirrors the PyTorch module's x_shape list.
    x_shape = [(n, OC1, OH1, OW1), (n, OC2, OH2, OW2), (n, NOUT)]
    return out, x_shape


# --------------------------- pure-JAX reference check ------------------------

def ref_forward(x, params):
    def conv(y, w, s):
        return jax.lax.conv_general_dilated(
            y, w, (s, s), "VALID", dimension_numbers=("NCHW", "OIHW", "NCHW"))
    h = jnp.tanh(conv(x, params["w1"], S1))
    h = jnp.tanh(conv(h, params["w2"], S2))
    h = h.reshape(h.shape[0], -1) @ params["w3"].T + params["b3"]
    return jax.nn.sigmoid(h)


# ------------------------------------ main -----------------------------------

if __name__ == "__main__":
    key = jax.random.PRNGKey(0)
    kx, k1, k2, k3, kb = jax.random.split(key, 5)

    # Input implied by Linear(in_features=588): 588 = 3*14*14 -> 32x32 input.
    x = jax.random.normal(kx, (2, 3, 32, 32), jnp.float32)

    params = {
        "w1": jax.random.normal(k1, (6, 3, 3, 3), jnp.float32) * 0.19,  # conv1
        "w2": jax.random.normal(k2, (3, 6, 4, 4), jnp.float32) * 0.10,  # conv2
        "w3": jax.random.normal(k3, (10, 588), jnp.float32) * 0.04,     # linear
        "b3": jax.random.normal(kb, (10,), jnp.float32) * 0.04,         # bias
    }

    packed = prepare_params(params)

    out, x_shape = cnn3_c13_forward(x, packed)
    out = jax.block_until_ready(out)

    assert out.shape == (2, 10)
    assert x_shape == [(2, 6, 30, 30), (2, 3, 14, 14), (2, 10)]

    ref = jax.block_until_ready(ref_forward(x, params))
    assert jnp.allclose(out, ref, rtol=1e-4, atol=1e-4), "mismatch vs JAX reference"

    print("KERNEL_OK")
</pallas_src>

<mosaic_0001>
module attributes {stable_mosaic.version = 11 : i64} {
  func.func @_cnn_kernel(%arg0: i32, %arg1: memref<12x256xf32, #tpu.memory_space<vmem>>, %arg2: memref<4x24x12xf32, #tpu.memory_space<vmem>>, %arg3: memref<4x3x24xf32, #tpu.memory_space<vmem>>, %arg4: memref<3x256x128xf32, #tpu.memory_space<vmem>>, %arg5: memref<1x128xf32, #tpu.memory_space<vmem>>, %arg6: memref<1x1x128xf32, #tpu.memory_space<vmem>>) attributes {dimension_semantics = [#tpu.dimension_semantics<parallel>], iteration_bounds = array<i64: 2>, scalar_prefetch = 0 : i64, scratch_operands = 0 : i64, tpu.core_type = #tpu.core_type<tc>, window_params = [{transform_indices = @transform_0, window_bounds = array<i64: 12, 256>}, {pipeline_mode = #tpu.pipeline_mode<synchronous>, transform_indices = @transform_1, window_bounds = array<i64: 4, 24, 12>}, {pipeline_mode = #tpu.pipeline_mode<synchronous>, transform_indices = @transform_2, window_bounds = array<i64: 4, 3, 24>}, {pipeline_mode = #tpu.pipeline_mode<synchronous>, transform_indices = @transform_3, window_bounds = array<i64: 3, 256, 128>}, {pipeline_mode = #tpu.pipeline_mode<synchronous>, transform_indices = @transform_4, window_bounds = array<i64: 1, 128>}, {transform_indices = @transform_5, window_bounds = array<i64: 1, 1, 128>}]} {
    %c0 = arith.constant 0 : index
    %c0_0 = arith.constant 0 : index
    %0 = vector.load %arg1[%c0, %c0_0] : memref<12x256xf32, #tpu.memory_space<vmem>>, vector<12x256xf32>
    %c0_1 = arith.constant 0 : index
    %c0_2 = arith.constant 0 : index
    %c0_3 = arith.constant 0 : index
    %1 = vector.load %arg2[%c0_1, %c0_2, %c0_3] : memref<4x24x12xf32, #tpu.memory_space<vmem>>, vector<1x24x12xf32>
    %2 = vector.shape_cast %1 : vector<1x24x12xf32> to vector<24x12xf32>
    %cst = arith.constant dense<0.000000e+00> : vector<24x256xf32>
    %3 = tpu.matmul %2, %0, %cst {dimension_numbers = #tpu.dot_dimension_numbers<[1], [0], [0], [1], [0, 0, 1, 1], [], []>} : vector<24x12xf32>, vector<12x256xf32>, vector<24x256xf32> -> vector<24x256xf32>
    %c1 = arith.constant 1 : index
    %c0_4 = arith.constant 0 : index
    %c0_5 = arith.constant 0 : index
    %4 = vector.load %arg2[%c1, %c0_4, %c0_5] : memref<4x24x12xf32, #tpu.memory_space<vmem>>, vector<1x24x12xf32>
    %5 = vector.shape_cast %4 : vector<1x24x12xf32> to vector<24x12xf32>
    %c255_i32 = arith.constant 255 : i32
    %6 = tpu.dynamic_rotate %0 by %c255_i32 dim 1 : vector<12x256xf32>, i32 -> vector<12x256xf32>
    %cst_6 = arith.constant dense<0.000000e+00> : vector<24x256xf32>
    %7 = tpu.matmul %5, %6, %cst_6 {dimension_numbers = #tpu.dot_dimension_numbers<[1], [0], [0], [1], [0, 0, 1, 1], [], []>} : vector<24x12xf32>, vector<12x256xf32>, vector<24x256xf32> -> vector<24x256xf32>
    %8 = arith.addf %3, %7 : vector<24x256xf32>
    %c2 = arith.constant 2 : index
    %c0_7 = arith.constant 0 : index
    %c0_8 = arith.constant 0 : index
    %9 = vector.load %arg2[%c2, %c0_7, %c0_8] : memref<4x24x12xf32, #tpu.memory_space<vmem>>, vector<1x24x12xf32>
    %10 = vector.shape_cast %9 : vector<1x24x12xf32> to vector<24x12xf32>
    %c240_i32 = arith.constant 240 : i32
    %11 = tpu.dynamic_rotate %0 by %c240_i32 dim 1 : vector<12x256xf32>, i32 -> vector<12x256xf32>
    %cst_9 = arith.constant dense<0.000000e+00> : vector<24x256xf32>
    %12 = tpu.matmul %10, %11, %cst_9 {dimension_numbers = #tpu.dot_dimension_numbers<[1], [0], [0], [1], [0, 0, 1, 1], [], []>} : vector<24x12xf32>, vector<12x256xf32>, vector<24x256xf32> -> vector<24x256xf32>
    %13 = arith.addf %8, %12 : vector<24x256xf32>
    %c3 = arith.constant 3 : index
    %c0_10 = arith.constant 0 : index
    %c0_11 = arith.constant 0 : index
    %14 = vector.load %arg2[%c3, %c0_10, %c0_11] : memref<4x24x12xf32, #tpu.memory_space<vmem>>, vector<1x24x12xf32>
    %15 = vector.shape_cast %14 : vector<1x24x12xf32> to vector<24x12xf32>
    %c239_i32 = arith.constant 239 : i32
    %16 = tpu.dynamic_rotate %0 by %c239_i32 dim 1 : vector<12x256xf32>, i32 -> vector<12x256xf32>
    %cst_12 = arith.constant dense<0.000000e+00> : vector<24x256xf32>
    %17 = tpu.matmul %15, %16, %cst_12 {dimension_numbers = #tpu.dot_dimension_numbers<[1], [0], [0], [1], [0, 0, 1, 1], [], []>} : vector<24x12xf32>, vector<12x256xf32>, vector<24x256xf32> -> vector<24x256xf32>
    %18 = arith.addf %13, %17 : vector<24x256xf32>
    %19 = math.tanh %18 : vector<24x256xf32>
    %c0_13 = arith.constant 0 : index
    %c0_14 = arith.constant 0 : index
    %c0_15 = arith.constant 0 : index
    %20 = vector.load %arg3[%c0_13, %c0_14, %c0_15] : memref<4x3x24xf32, #tpu.memory_space<vmem>>, vector<1x3x24xf32>
    %21 = vector.shape_cast %20 : vector<1x3x24xf32> to vector<3x24xf32>
    %cst_16 = arith.constant dense<0.000000e+00> : vector<3x256xf32>
    %22 = tpu.matmul %21, %19, %cst_16 {dimension_numbers = #tpu.dot_dimension_numbers<[1], [0], [0], [1], [0, 0, 1, 1], [], []>} : vector<3x24xf32>, vector<24x256xf32>, vector<3x256xf32> -> vector<3x256xf32>
    %c1_17 = arith.constant 1 : index
    %c0_18 = arith.constant 0 : index
    %c0_19 = arith.constant 0 : index
    %23 = vector.load %arg3[%c1_17, %c0_18, %c0_19] : memref<4x3x24xf32, #tpu.memory_space<vmem>>, vector<1x3x24xf32>
    %24 = vector.shape_cast %23 : vector<1x3x24xf32> to vector<3x24xf32>
    %c255_i32_20 = arith.constant 255 : i32
    %25 = tpu.dynamic_rotate %19 by %c255_i32_20 dim 1 : vector<24x256xf32>, i32 -> vector<24x256xf32>
    %cst_21 = arith.constant dense<0.000000e+00> : vector<3x256xf32>
    %26 = tpu.matmul %24, %25, %cst_21 {dimension_numbers = #tpu.dot_dimension_numbers<[1], [0], [0], [1], [0, 0, 1, 1], [], []>} : vector<3x24xf32>, vector<24x256xf32>, vector<3x256xf32> -> vector<3x256xf32>
    %27 = arith.addf %22, %26 : vector<3x256xf32>
    %c2_22 = arith.constant 2 : index
    %c0_23 = arith.constant 0 : index
    %c0_24 = arith.constant 0 : index
    %28 = vector.load %arg3[%c2_22, %c0_23, %c0_24] : memref<4x3x24xf32, #tpu.memory_space<vmem>>, vector<1x3x24xf32>
    %29 = vector.shape_cast %28 : vector<1x3x24xf32> to vector<3x24xf32>
    %c240_i32_25 = arith.constant 240 : i32
    %30 = tpu.dynamic_rotate %19 by %c240_i32_25 dim 1 : vector<24x256xf32>, i32 -> vector<24x256xf32>
    %cst_26 = arith.constant dense<0.000000e+00> : vector<3x256xf32>
    %31 = tpu.matmul %29, %30, %cst_26 {dimension_numbers = #tpu.dot_dimension_numbers<[1], [0], [0], [1], [0, 0, 1, 1], [], []>} : vector<3x24xf32>, vector<24x256xf32>, vector<3x256xf32> -> vector<3x256xf32>
    %32 = arith.addf %27, %31 : vector<3x256xf32>
    %c3_27 = arith.constant 3 : index
    %c0_28 = arith.constant 0 : index
    %c0_29 = arith.constant 0 : index
    %33 = vector.load %arg3[%c3_27, %c0_28, %c0_29] : memref<4x3x24xf32, #tpu.memory_space<vmem>>, vector<1x3x24xf32>
    %34 = vector.shape_cast %33 : vector<1x3x24xf32> to vector<3x24xf32>
    %c239_i32_30 = arith.constant 239 : i32
    %35 = tpu.dynamic_rotate %19 by %c239_i32_30 dim 1 : vector<24x256xf32>, i32 -> vector<24x256xf32>
    %cst_31 = arith.constant dense<0.000000e+00> : vector<3x256xf32>
    %36 = tpu.matmul %34, %35, %cst_31 {dimension_numbers = #tpu.dot_dimension_numbers<[1], [0], [0], [1], [0, 0, 1, 1], [], []>} : vector<3x24xf32>, vector<24x256xf32>, vector<3x256xf32> -> vector<3x256xf32>
    %37 = arith.addf %32, %36 : vector<3x256xf32>
    %38 = math.tanh %37 : vector<3x256xf32>
    %39 = vector.shape_cast %38 : vector<3x256xf32> to vector<3x1x256xf32>
    %c0_32 = arith.constant 0 : index
    %c0_33 = arith.constant 0 : index
    %40 = vector.load %arg5[%c0_32, %c0_33] : memref<1x128xf32, #tpu.memory_space<vmem>>, vector<1x128xf32>
    %41 = vector.extract_strided_slice %39 {offsets = [0, 0, 0], sizes = [1, 1, 256], strides = [1, 1, 1]} : vector<3x1x256xf32> to vector<1x1x256xf32>
    %42 = vector.shape_cast %41 : vector<1x1x256xf32> to vector<1x256xf32>
    %c0_34 = arith.constant 0 : index
    %c0_35 = arith.constant 0 : index
    %c0_36 = arith.constant 0 : index
    %43 = vector.load %arg4[%c0_34, %c0_35, %c0_36] : memref<3x256x128xf32, #tpu.memory_space<vmem>>, vector<1x256x128xf32>
    %44 = vector.shape_cast %43 : vector<1x256x128xf32> to vector<256x128xf32>
    %cst_37 = arith.constant dense<0.000000e+00> : vector<1x128xf32>
    %45 = tpu.matmul %42, %44, %cst_37 {dimension_numbers = #tpu.dot_dimension_numbers<[1], [0], [0], [1], [0, 0, 1, 1], [], []>} : vector<1x256xf32>, vector<256x128xf32>, vector<1x128xf32> -> vector<1x128xf32>
    %46 = arith.addf %40, %45 : vector<1x128xf32>
    %47 = vector.extract_strided_slice %39 {offsets = [1, 0, 0], sizes = [1, 1, 256], strides = [1, 1, 1]} : vector<3x1x256xf32> to vector<1x1x256xf32>
    %48 = vector.shape_cast %47 : vector<1x1x256xf32> to vector<1x256xf32>
    %c1_38 = arith.constant 1 : index
    %c0_39 = arith.constant 0 : index
    %c0_40 = arith.constant 0 : index
    %49 = vector.load %arg4[%c1_38, %c0_39, %c0_40] : memref<3x256x128xf32, #tpu.memory_space<vmem>>, vector<1x256x128xf32>
    %50 = vector.shape_cast %49 : vector<1x256x128xf32> to vector<256x128xf32>
    %cst_41 = arith.constant dense<0.000000e+00> : vector<1x128xf32>
    %51 = tpu.matmul %48, %50, %cst_41 {dimension_numbers = #tpu.dot_dimension_numbers<[1], [0], [0], [1], [0, 0, 1, 1], [], []>} : vector<1x256xf32>, vector<256x128xf32>, vector<1x128xf32> -> vector<1x128xf32>
    %52 = arith.addf %46, %51 : vector<1x128xf32>
    %53 = vector.extract_strided_slice %39 {offsets = [2, 0, 0], sizes = [1, 1, 256], strides = [1, 1, 1]} : vector<3x1x256xf32> to vector<1x1x256xf32>
    %54 = vector.shape_cast %53 : vector<1x1x256xf32> to vector<1x256xf32>
    %c2_42 = arith.constant 2 : index
    %c0_43 = arith.constant 0 : index
    %c0_44 = arith.constant 0 : index
    %55 = vector.load %arg4[%c2_42, %c0_43, %c0_44] : memref<3x256x128xf32, #tpu.memory_space<vmem>>, vector<1x256x128xf32>
    %56 = vector.shape_cast %55 : vector<1x256x128xf32> to vector<256x128xf32>
    %cst_45 = arith.constant dense<0.000000e+00> : vector<1x128xf32>
    %57 = tpu.matmul %54, %56, %cst_45 {dimension_numbers = #tpu.dot_dimension_numbers<[1], [0], [0], [1], [0, 0, 1, 1], [], []>} : vector<1x256xf32>, vector<256x128xf32>, vector<1x128xf32> -> vector<1x128xf32>
    %58 = arith.addf %52, %57 : vector<1x128xf32>
    %cst_46 = arith.constant 0.000000e+00 : f32
    %59 = vector.broadcast %cst_46 : f32 to vector<1x128xf32>
    %60 = arith.subf %59, %58 : vector<1x128xf32>
    %61 = math.exp %60 : vector<1x128xf32>
    %cst_47 = arith.constant 1.000000e+00 : f32
    %62 = vector.broadcast %cst_47 : f32 to vector<1x128xf32>
    %63 = arith.addf %62, %61 : vector<1x128xf32>
    %cst_48 = arith.constant 1.000000e+00 : f32
    %64 = vector.broadcast %cst_48 : f32 to vector<1x128xf32>
    %65 = arith.divf %64, %63 : vector<1x128xf32>
    %c0_49 = arith.constant 0 : index
    %c0_50 = arith.constant 0 : index
    %c0_51 = arith.constant 0 : index
    %66 = vector.load %arg6[%c0_49, %c0_50, %c0_51] : memref<1x1x128xf32, #tpu.memory_space<vmem>>, vector<1x1x128xf32>
    %67 = vector.shape_cast %66 : vector<1x1x128xf32> to vector<1x128xf32>
    %68 = vector.shape_cast %65 : vector<1x128xf32> to vector<1x1x128xf32>
    tpu.vector_store %arg6[%c0_49, %c0_50, %c0_51], %68 {strides = array<i32>} : memref<1x1x128xf32, #tpu.memory_space<vmem>>, vector<1x1x128xf32>,
    return
  }
  func.func @transform_0(%arg0: i32) -> (i32, i32) {
    %c0_i32 = arith.constant 0 : i32
    %c0_i32_0 = arith.constant 0 : i32
    return %c0_i32, %arg0 : i32, i32
  }
  func.func @transform_1(%arg0: i32) -> (i32, i32, i32) {
    %c0_i32 = arith.constant 0 : i32
    %c0_i32_0 = arith.constant 0 : i32
    %c0_i32_1 = arith.constant 0 : i32
    %c0_i32_2 = arith.constant 0 : i32
    return %c0_i32, %c0_i32_0, %c0_i32_1 : i32, i32, i32
  }
  func.func @transform_2(%arg0: i32) -> (i32, i32, i32) {
    %c0_i32 = arith.constant 0 : i32
    %c0_i32_0 = arith.constant 0 : i32
    %c0_i32_1 = arith.constant 0 : i32
    %c0_i32_2 = arith.constant 0 : i32
    return %c0_i32, %c0_i32_0, %c0_i32_1 : i32, i32, i32
  }
  func.func @transform_3(%arg0: i32) -> (i32, i32, i32) {
    %c0_i32 = arith.constant 0 : i32
    %c0_i32_0 = arith.constant 0 : i32
    %c0_i32_1 = arith.constant 0 : i32
    %c0_i32_2 = arith.constant 0 : i32
    return %c0_i32, %c0_i32_0, %c0_i32_1 : i32, i32, i32
  }
  func.func @transform_4(%arg0: i32) -> (i32, i32) {
    %c0_i32 = arith.constant 0 : i32
    %c0_i32_0 = arith.constant 0 : i32
    %c0_i32_1 = arith.constant 0 : i32
    return %c0_i32, %c0_i32_0 : i32, i32
  }
  func.func @transform_5(%arg0: i32) -> (i32, i32, i32) {
    %c0_i32 = arith.constant 0 : i32
    %c0_i32_0 = arith.constant 0 : i32
    %c0_i32_1 = arith.constant 0 : i32
    return %arg0, %c0_i32, %c0_i32_0 : i32, i32, i32
  }
}

</mosaic_0001>

<bundles_post_ra>
// kernel: _forward.1
= control target key start
LH: loop header
LB: loop body
LE: loop exit
PB: predicated region body
PF: predicated region fallthrough
CT: control target
= control target key end

     0   :  { %10 = vsyncpa [#allocation4], 0  ;;  %s2072_s0 = inlined_call_operand.vmem [shape: f32[12,512], index: 0, kind: input, shape index: {}]   ;;  %s2073_s1 = inlined_call_operand.vmem [shape: f32[4,24,12], index: 1, kind: input, shape index: {}]   ;;  %s2074_s2 = inlined_call_operand.vmem [shape: f32[4,3,24], index: 2, kind: input, shape index: {}]   ;;  %s2075_s3 = inlined_call_operand.vmem [shape: f32[3,256,128], index: 3, kind: input, shape index: {}]   ;;  %s2076_s4 = inlined_call_operand.vmem [shape: f32[1,128], index: 4, kind: input, shape index: {}]   ;;  %s2077_s5 = inlined_call_operand.hbm [shape: f32[2,1,128], index: 5, kind: output, shape index: {}]  }
   0x1   :  { %12 = vsyncpa [#allocation4 + $0x1], 0  ;;  %s1513_s18 = smov 0   ;;  %s1515_s19 = smov 0  }
   0x2   :  { %s1517_s20 = smov 0   ;;  %s1519_s21 = smov 0  }
   0x3 LB: > { %s1162_s22 = sadd.s32 4294967295, %s1478_s21   ;;  %s1163_s23 = sadd.s32 4294967294, %s1478_s21   ;;  %s1478_s21 = sphi %s1519_s21, %s2083_s21   ;;  %s1474_s20 = sphi %s1517_s20, %s2082_s20   ;;  %s1470_s19 = sphi %s1515_s19, %s2081_s19   ;;  %s1466_s18 = sphi %s1513_s18, %s2080_s18  }
   0x4   : > { %s1536_s24 = sadd.s32 1, %s1478_s21   ;;  %s25_s25 = sadd.s32 1, %s1474_s20 }
   0x5   : > { %s22_s26 = ssub.s32 %s1478_s21, %s1536_s24  ;;  %p32_p0 = scmp.ne.s32.totalorder %s1474_s20, %s1470_s19 }
   0x6   : > { %p23_p1 = scmp.eq.s32.totalorder %s22_s26, 0  ;;  %p33_p2 = scmp.eq.s32.totalorder %s1478_s21, 0 }
   0x7   : > { %p146_p3 = scmp.eq.s32.totalorder %s1162_s22, 1  ;;  %p151_p4 = scmp.ne.s32.totalorder %s1470_s19, %s1466_s18 }
   0x8   : > { %s1549_s27 = scalar_select %p23_p1, %s1474_s20, %s25_s25  }
   0x9   : > { %p34_p5 = por %p33_p2, %p32_p0  ;;  %p1551_p6 = por %p146_p3, %p32_p0 }
   0xa   : > { %p152_p7 = scmp.eq.s32.totalorder %s1163_s23, 1  ;;  %p1165_p9 = scmp.ge.s32.totalorder %s1478_s21, 2 }
   0xc   : > { %p1555_p8 = por %p152_p7, %p151_p4  ;;  %180 = sbr.rel (%p1165_p9) target bundleno = 25 (0x19), region = 32 }
  0x11   : > { %183 = sbr.rel (!%p34_p5) target bundleno = 25 (0x19), region = 36  ;;  %s185_s30 = sand.u32 (%p34_p5), 1, %s1474_s20  }
  0x12   : > { %s1289_s6 = sshll.u32 (%p34_p5), %s1478_s21, 4  ;;  %s1166_s7 = sshll.u32 (%p34_p5), %s185_s30, 5 }
  0x13   : > { %s190_s10 = scalar_lea.vmem (%p34_p5), %s2072_s0, %s1289_s6  ;;  %s187_s11 = scalar_lea.vmem (%p34_p5), [#allocation2], %s1166_s7 }
  0x14   : > { %v203_v0 = vld [vmem:[%s190_s10] sm:$0xff] (%p34_p5)  ;;  %v205_v1 = vld [vmem:[%s190_s10 + $0x8] sm:$0xff] (%p34_p5) }
  0x15   : > { %v207_v2 = vld [vmem:[%s190_s10 + $0x20] sm:$0xff] (%p34_p5)  ;;  %204 = vst [vmem:[%s187_s11] sm:$0xff] (%p34_p5), %v203_v0  ;;  %v209_v3 = vld [vmem:[%s190_s10 + $0x28] sm:$0xff] (%p34_p5) }
  0x16   : > { %206 = vst [vmem:[%s187_s11 + $0x8] sm:$0xff] %v205_v1 }
  0x17   : > { %208 = vst [vmem:[%s187_s11 + $0x10] sm:$0xff] %v207_v2 }
  0x18   : > { %210 = vst [vmem:[%s187_s11 + $0x18] sm:$0xff] %v209_v3 }
  0x19 PF: > { %p1169_p10 = scmp.ge.s32.totalorder %s1478_s21, 1  ;;  %p215_p11 = scmp.lt.s32.totalorder %s1478_s21, 3 }
  0x1b   : > { %p216_p12 = pnand %p1169_p10, %p215_p11 }
  0x1c   : > { %s1570_s12 = sand.u32 (!%p216_p12), 1, %s1470_s19   ;;  %s1480_s15 = smov (!%p216_p12), 127  }
  0x1d   : > { %219 = sbr.rel (%p216_p12) target bundleno = 816 (0x330), region = 59  ;;  %s1170_s13 = sshll.u32 (!%p216_p12), %s1570_s12, 5 }
  0x1e   : > { %s224_s14 = scalar_lea.vmem (!%p216_p12), [#allocation2], %s1170_s13  ;;  %s1481_s16 = smov (!%p216_p12), 111  }
  0x1f   : > { %s1482_s17 = smov (!%p216_p12), 112   ;;  %s1098_s8 = scalar_lea.hbm (!%p216_p12), %s2077_s5, %s1162_s22 }
  0x20   : > { %s247_s9 = scalar_lea.vmem (!%p216_p12), [#allocation3], %s1570_s12  ;;  %s1102_s11 = sshll.u32 (!%p216_p12), %s1098_s8, 4  ;;  %s1103_s11 = int_to_ptr.hbm [resolvable:$true] %s1102_s11 }
  0x21   : > { %s1100_s10 = sshll.u32 (!%p216_p12), %s247_s9, 4  ;;  %s1090_s22 = scalar_lea.sflag (!%p216_p12), [#allocation4], %s1570_s12  ;;  %s1101_s10 = int_to_ptr.vmem [resolvable:$true] %s1100_s10 }
  0x22   : > { %v251_v4 = vld [vmem:[%s224_s14 + $0x10] sm:$0xf]  ;;  %v252_v5 = vld [vmem:[%s224_s14 + $0x18] sm:$0xf]  ;;  %v249_v6 = vld [vmem:[%s224_s14] sm:$0xff]  ;;  %v268_v10 = vlaneseq  ;;  %vm285_vm1 = vcmask 1043456  }
  0x23   : > { %262 = vrot.lane.b32.xlu0 %v251_v4, %s1480_s15  ;;  %v250_v7 = vld [vmem:[%s224_s14 + $0x8] sm:$0xff]  ;;  %511 = vrot.lane.b32.xlu2 %v252_v5, %s1481_s16  ;;  %v1172_v22 = vld [vmem:[%s2073_s1 + $0x20] sm:$0xff]  ;;  %vm275_vm2 = vcmask 97280   ;;  %vm618_vm5 = vcmask 195584   ;;  %s1430_s13 = sshra.s32 %s1103_s11, 4  ;;  %s1431_s13 = int_to_ptr.hbm [resolvable:$true] %s1430_s13 }
  0x24   : > { %v1336_v8 = vpack.i.bf16 %v250_v7, %v249_v6  ;;  %v1582_v12 = vand.u32 127, %v268_v10  ;;  %v1171_v27 = vld [vmem:[%s2073_s1 + $0x18] sm:$0xff]  ;;  %v1173_v35 = vld [vmem:[%s2073_s1 + $0x28] sm:$0xff]  ;;  %v1190_v41 = vld [vmem:[%s2073_s1 + $0x30] sm:$0xff]  ;;  %s1432_s14 = scalar_lea.hbm %s1431_s13, 1  ;;  %p1437_p2 = scmp.lt.s32.totalorder %s1431_s13, %s2077_s5 }
  0x25   : > { %v253_v42 = vld [vmem:[%s2073_s1] sm:$0xff]  ;;  %v1191_v43 = vld [vmem:[%s2073_s1 + $0x38] sm:$0xff]  ;;  %v254_v44 = vld [vmem:[%s2073_s1 + $0x8] sm:$0xff]  ;;  %p1433_p13 = scmp.ne.s32.totalorder %s1431_s13, %s1432_s14 }
  0x26   : > { %1337 = vrot.lane.b32.xlu1 %v1336_v8, %s1480_s15  ;;  %vm270_vm0 = vcmp.lt.s32.totalorder %v1582_v12, 127  ;;  %vm513_vm3 = vcmp.lt.s32.totalorder %v1582_v12, 111  ;;  %vm423_vm4 = vcmp.lt.s32.totalorder %v1582_v12, 112  ;;  %v1192_v45 = vld [vmem:[%s2073_s1 + $0x40] sm:$0xff]  ;;  %v255_v46 = vld [vmem:[%s2073_s1 + $0x10] sm:$0xff]  ;;  %v1201_v47 = vld [vmem:[%s2073_s1 + $0x48] sm:$0xff] }
  0x27   : > { %v1202_v48 = vld [vmem:[%s2073_s1 + $0x50] sm:$0xff]  ;;  %v1203_v49 = vld [vmem:[%s2073_s1 + $0x58] sm:$0xff]  ;;  %p1434_p0 = pnand %p1433_p13, %p1551_p6 }
  0x28   : > { %v1254_v12 = vld [vmem:[%s2075_s3 + $0x1f8] sm:$0xff] }
  0x29   : > { %p1435_p1 = pneg %p1434_p0 }
  0x2b   : > { %266 = vrot.lane.b32.xlu0 %v252_v5, %s1480_s15  ;;  %1342 = vrot.lane.b32.xlu2 %v1336_v8, %s1481_s16 }
  0x2e   : > { %507 = vrot.lane.b32.xlu1 %v251_v4, %s1481_s16 }
  0x33   : > { %417 = vrot.lane.b32.xlu0 %v251_v4, %s1482_s17  ;;  %1347 = vrot.lane.b32.xlu2 %v1336_v8, %s1482_s17 }
  0x36   : > { %421 = vrot.lane.b32.xlu1 %v252_v5, %s1482_s17 }
  0x7d   : > { %v512_v9 = vpop.permute.xlu2 %511 }
  0x85   : > { %v1343_v13 = vpop.permute.xlu2 %1342 }
  0x86   : > { %v1345_v25 = vunpack.i.h.bf16 %v1343_v13  ;;  %v1344_v26 = vunpack.i.l.bf16 %v1343_v13 }
  0x88   : > { %v514_v33 = vsel %vm513_vm3, %v1344_v26, %v1345_v25  ;;  %v516_v34 = vsel %vm513_vm3, %v1345_v25, %v1344_v26 }
  0x8d   : > { %v1348_v24 = vpop.permute.xlu2 %1347 }
  0x8e   : > { %v1350_v30 = vunpack.i.h.bf16 %v1348_v24  ;;  %v1349_v31 = vunpack.i.l.bf16 %v1348_v24 }
  0x90   : > { %v424_v37 = vsel %vm423_vm4, %v1349_v31, %v1350_v30  ;;  %v426_v40 = vsel %vm423_vm4, %v1350_v30, %v1349_v31 }
  0x95   : > { %v263_v11 = vpop.permute.xlu0 %262 }
  0x98   : > { %v1338_v14 = vpop.permute.xlu1 %1337 }
  0x99   : > { %v1340_v15 = vunpack.i.h.bf16 %v1338_v14  ;;  %v1339_v16 = vunpack.i.l.bf16 %v1338_v14 }
  0x9b   : > { %v271_v20 = vsel %vm270_vm0, %v1339_v16, %v1340_v15  ;;  %v273_v21 = vsel %vm270_vm0, %v1340_v15, %v1339_v16 }
  0x9d   : > { %v267_v17 = vpop.permute.xlu0 %266 }
  0x9e   : > { %v272_v18 = vsel %vm270_vm0, %v263_v11, %v267_v17  ;;  %v274_v19 = vsel %vm270_vm0, %v267_v17, %v263_v11 }
  0x9f   : > { %1174 = vmatpush.msk.msra.mxu0 %vm285_vm1, %v272_v18  ;;  %1290 = vmatpush.msk.msra.mxu2 %vm285_vm1, %v272_v18 }
  0xa0   : > { %1178 = vmatpush.msk.msra.mxu1 %vm285_vm1, %v274_v19  ;;  %1292 = vmatpush.msk.msra.mxu3 %vm285_vm1, %v274_v19  ;;  %v508_v23 = vpop.permute.xlu1 %507 }
  0xa1   : > { %307 = vmatpush.msra.mxu0 %v271_v20  ;;  %1291 = vmatpush.msra.mxu2 %v271_v20  ;;  %v515_v28 = vsel %vm513_vm3, %v508_v23, %v512_v9  ;;  %v517_v29 = vsel %vm513_vm3, %v512_v9, %v508_v23 }
  0xa2   : > { %333 = vmatpush.msra.mxu1 %v273_v21  ;;  %1293 = vmatpush.msra.mxu3 %v273_v21 }
  0xa3   : > { %1176 = vmatmul.msk.f32.vlgmr.msra.gmra.mxu2 %vm275_vm2, %v1172_v22  ;;  %1180 = vmatmul.msk.f32.vlgmr.msra.gmra.mxu3 %vm275_vm2, %v1172_v22 }
  0xa4   : > { %1182 = vmatpush.msk.msrb.mxu2 %vm285_vm1, %v251_v4  ;;  %1186 = vmatpush.msk.msrb.mxu3 %vm285_vm1, %v252_v5 }
  0xa5   : > { %1175 = vmatmul.msk.f32.vlgmr.msra.gmra.mxu0 %vm275_vm2, %v1171_v27  ;;  %1179 = vmatmul.msk.f32.vlgmr.msra.gmra.mxu1 %vm275_vm2, %v1171_v27  ;;  %v418_v32 = vpop.permute.xlu0 %417 }
  0xa6   : > { %374 = vmatpush.msrb.mxu2 %v249_v6  ;;  %400 = vmatpush.msrb.mxu3 %v250_v7 }
  0xa8   : > { %1204 = vmatpush.msk.msra.mxu2 %vm285_vm1, %v515_v28  ;;  %1208 = vmatpush.msk.msra.mxu3 %vm285_vm1, %v517_v29  ;;  %v422_v36 = vpop.permute.xlu1 %421 }
  0xa9   : > { %v425_v38 = vsel %vm423_vm4, %v418_v32, %v422_v36  ;;  %v427_v39 = vsel %vm423_vm4, %v422_v36, %v418_v32 }
  0xaa   : > { %548 = vmatpush.msra.mxu2 %v514_v33  ;;  %574 = vmatpush.msra.mxu3 %v516_v34 }
  0xab   : > { %1193 = vmatpush.msk.msrb.mxu0 %vm285_vm1, %v425_v38  ;;  %1197 = vmatpush.msk.msrb.mxu1 %vm285_vm1, %v427_v39  ;;  %v597_v38 = vld [vmem:[%s2074_s2] sm:$0x7] }
  0xac   : > { %1177 = vmatmul.msk.f32.gmra.mxu2 %vm275_vm2, %v1173_v35  ;;  %1181 = vmatmul.msk.f32.gmra.mxu3 %vm275_vm2, %v1173_v35 }
  0xad   : > { %458 = vmatpush.msrb.mxu0 %v424_v37  ;;  %484 = vmatpush.msrb.mxu1 %v426_v40 }
  0xae   : > { %1194 = vmatmul.msk.f32.vlgmr.msrb.gmra.mxu0 %vm275_vm2, %v1190_v41  ;;  %1198 = vmatmul.msk.f32.vlgmr.msrb.gmra.mxu1 %vm275_vm2, %v1190_v41 }
  0xb4   : > { %1183 = vmatmul.msk.f32.vlgmr.msrb.gmra.mxu2 %vm275_vm2, %v253_v42  ;;  %1187 = vmatmul.msk.f32.vlgmr.msrb.gmra.mxu3 %vm275_vm2, %v253_v42 }
  0xb6   : > { %1195 = vmatmul.msk.f32.gmra.mxu0 %vm275_vm2, %v1191_v43  ;;  %1199 = vmatmul.msk.f32.gmra.mxu1 %vm275_vm2, %v1191_v43 }
  0xbc   : > { %1184 = vmatmul.msk.f32.gmra.mxu2 %vm275_vm2, %v254_v44  ;;  %1188 = vmatmul.msk.f32.gmra.mxu3 %vm275_vm2, %v254_v44 }
  0xbe   : > { %1196 = vmatmul.msk.f32.gmra.mxu0 %vm275_vm2, %v1192_v45  ;;  %1200 = vmatmul.msk.f32.gmra.mxu1 %vm275_vm2, %v1192_v45 }
  0xc4   : > { %1185 = vmatmul.msk.f32.gmra.mxu2 %vm275_vm2, %v255_v46  ;;  %1189 = vmatmul.msk.f32.gmra.mxu3 %vm275_vm2, %v255_v46 }
  0xcc   : > { %1205 = vmatmul.msk.f32.vlgmr.msra.gmra.mxu2 %vm275_vm2, %v1201_v47  ;;  %1209 = vmatmul.msk.f32.vlgmr.msra.gmra.mxu3 %vm275_vm2, %v1201_v47 }
  0xd4   : > { %1206 = vmatmul.msk.f32.gmra.mxu2 %vm275_vm2, %v1202_v48  ;;  %1210 = vmatmul.msk.f32.gmra.mxu3 %vm275_vm2, %v1202_v48 }
  0xdc   : > { %1207 = vmatmul.msk.f32.gmra.mxu2 %vm275_vm2, %v1203_v49  ;;  %1211 = vmatmul.msk.f32.gmra.mxu3 %vm275_vm2, %v1203_v49 }
 0x122   : > { %v309_v56 = vpop.f32.mrf.mxu0  ;;  %v335_v57 = vpop.f32.mrf.mxu1 }
 0x126   : > { %v312_v50 = vpop.f32.mrf.mxu2  ;;  %v338_v51 = vpop.f32.mrf.mxu3 }
 0x12b   : > { %v460_v60 = vpop.f32.mrf.mxu0  ;;  %v486_v61 = vpop.f32.mrf.mxu1 }
 0x12f   : > { %v315_v52 = vpop.f32.mrf.mxu2  ;;  %v341_v53 = vpop.f32.mrf.mxu3 }
 0x133   : > { %v463_v8 = vpop.f32.mrf.mxu0  ;;  %v489_v9 = vpop.f32.mrf.mxu1 }
 0x137   : > { %v376_v54 = vpop.f32.mrf.mxu2  ;;  %v402_v55 = vpop.f32.mrf.mxu3 }
 0x138   : > { %v377_v0 = vadd.f32 %v376_v54, %v309_v56  ;;  %v403_v1 = vadd.f32 %v402_v55, %v335_v57 }
 0x13a   : > { %v495_v2 = vadd.f32 %v460_v60, %v377_v0  ;;  %v496_v3 = vadd.f32 %v486_v61, %v403_v1 }
 0x13b   : > { %v466_v24 = vpop.f32.mrf.mxu0  ;;  %v492_v25 = vpop.f32.mrf.mxu1 }
 0x13f   : > { %v379_v58 = vpop.f32.mrf.mxu2  ;;  %v405_v59 = vpop.f32.mrf.mxu3 }
 0x140   : > { %v380_v10 = vadd.f32 %v379_v58, %v312_v50  ;;  %v406_v11 = vadd.f32 %v405_v59, %v338_v51 }
 0x142   : > { %v497_v13 = vadd.f32 %v463_v8, %v380_v10  ;;  %v498_v14 = vadd.f32 %v489_v9, %v406_v11 }
 0x147   : > { %v382_v62 = vpop.f32.mrf.mxu2  ;;  %v408_v63 = vpop.f32.mrf.mxu3 }
 0x148   : > { %v383_v21 = vadd.f32 %v382_v62, %v315_v52  ;;  %v409_v22 = vadd.f32 %v408_v63, %v341_v53  ;;  %v1212_v62 = vld [vmem:[%s2074_s2 + $0x4] sm:$0x7] }
 0x14a   : > { %v499_v26 = vadd.f32 %v466_v24, %v383_v21  ;;  %v500_v27 = vadd.f32 %v492_v25, %v409_v22  ;;  %v1217_v21 = vld [vmem:[%s2074_s2 + $0x8] sm:$0x7] }
 0x14b   : > { %v867_v24 = vld [vmem:[%s2075_s3 + $0xe8] sm:$0xff] }
 0x14f   : > { %v550_v4 = vpop.f32.mrf.mxu2  ;;  %v576_v5 = vpop.f32.mrf.mxu3 }
 0x150   : > { %v585_v6 = vadd.f32 %v550_v4, %v495_v2  ;;  %v586_v7 = vadd.f32 %v576_v5, %v496_v3 }
 0x152   : > { %1396 = vtanh.f32 %v585_v6 }
 0x153   : > { %1398 = vtanh.f32 %v586_v7 }
 0x157   : > { %v553_v15 = vpop.f32.mrf.mxu2  ;;  %v579_v16 = vpop.f32.mrf.mxu3 }
 0x158   : > { %v1397_v17 = vpop.eup %1396  ;;  %v587_v18 = vadd.f32 %v553_v15, %v497_v13  ;;  %v588_v19 = vadd.f32 %v579_v16, %v498_v14  ;;  %v853_v15 = vld [vmem:[%s2075_s3 + $0x78] sm:$0xff] }
 0x159   : > { %v1399_v20 = vpop.eup %1398  ;;  %v869_v16 = vld [vmem:[%s2075_s3 + $0xf8] sm:$0xff] }
 0x15a   : > { %1400 = vtanh.f32 %v587_v18  ;;  %v1351_v23 = vpack.i.bf16 %v1399_v20, %v1397_v17 }
 0x15b   : > { %1402 = vtanh.f32 %v588_v19  ;;  %v852_v19 = vld [vmem:[%s2075_s3 + $0x70] sm:$0xff] }
 0x15c   : > { %1352 = vrot.lane.b32.xlu2 %v1351_v23, %s1480_s15 }
 0x15f   : > { %v556_v28 = vpop.f32.mrf.mxu2  ;;  %v582_v29 = vpop.f32.mrf.mxu3 }
 0x160   : > { %v1401_v30 = vpop.eup %1400  ;;  %v589_v31 = vadd.f32 %v556_v28, %v499_v26  ;;  %v590_v32 = vadd.f32 %v582_v29, %v500_v27  ;;  %v1220_v27 = vld [vmem:[%s2074_s2 + $0xc] sm:$0x7] }
 0x161   : > { %v1403_v33 = vpop.eup %1402 }
 0x162   : > { %1404 = vtanh.f32 %v589_v31  ;;  %v1356_v34 = vpack.i.bf16 %v1403_v33, %v1401_v30  ;;  %v866_v31 = vld [vmem:[%s2075_s3 + $0xe0] sm:$0xff] }
 0x163   : > { %1406 = vtanh.f32 %v590_v32  ;;  %v1238_v32 = vld [vmem:[%s2075_s3 + $0x178] sm:$0xff] }
 0x164   : > { %1357 = vrot.lane.b32.xlu1 %v1356_v34, %s1480_s15 }
 0x168   : > { %v1405_v35 = vpop.eup %1404 }
 0x169   : > { %v1407_v36 = vpop.eup %1406  ;;  %678 = vmatpush.msrb.mxu2 %v1405_v35 }
 0x16a   : > { %698 = vmatpush.msrb.mxu3 %v1407_v36  ;;  %v1366_v37 = vpack.i.bf16 %v1407_v36, %v1405_v35  ;;  %v1237_v35 = vld [vmem:[%s2075_s3 + $0x170] sm:$0xff] }
 0x16b   : > { %679 = vmatpush.msrb.mxu2 %v1401_v30  ;;  %v850_v30 = vld [vmem:[%s2075_s3 + $0x60] sm:$0xff]  ;;  %v1253_v36 = vld [vmem:[%s2075_s3 + $0x1f0] sm:$0xff] }
 0x16c   : > { %699 = vmatpush.msrb.mxu3 %v1403_v33  ;;  %1362 = vrot.lane.b32.xlu1 %v1356_v34, %s1481_s16  ;;  %v849_v33 = vld [vmem:[%s2075_s3 + $0x58] sm:$0xff] }
 0x16d   : > { %1367 = vrot.lane.b32.xlu0 %v1366_v37, %s1480_s15  ;;  %1377 = vrot.lane.b32.xlu2 %v1366_v37, %s1482_s17  ;;  %s1436_s15 = scalar_lea.hbm %s2077_s5, 2 }
 0x16e   : > { %680 = vmatpush.msrb.mxu2 %v1397_v17  ;;  %700 = vmatpush.msrb.mxu3 %v1399_v20  ;;  %v868_v20 = vld [vmem:[%s2075_s3 + $0xf0] sm:$0xff]  ;;  %p1438_p3 = scmp.lt.s32.totalorder %s1436_s15, %s1432_s14 }
 0x16f   : > { %1215 = vmatmul.msk.f32.vlgmr.msrb.gmra.mxu2 %vm618_vm5, %v597_v38  ;;  %1216 = vmatmul.msk.f32.vlgmr.msrb.gmra.mxu3 %vm618_vm5, %v597_v38  ;;  %v864_v38 = vld [vmem:[%s2075_s3 + $0xd0] sm:$0xff] }
 0x170   : > { %p1439_p4 = por %p1438_p3, %p1437_p2 }
 0x172   : > { %p1440_p5 = pnand %p1439_p4, %p1435_p1 }
 0x174   : > { %1387 = vrot.lane.b32.xlu1 %v1356_v34, %s1482_s17  ;;  %v865_v34 = vld [vmem:[%s2075_s3 + $0xd8] sm:$0xff] }
 0x175   : > { %1372 = vrot.lane.b32.xlu0 %v1366_v37, %s1481_s16  ;;  %1392 = vrot.lane.b32.xlu2 %v1351_v23, %s1482_s17  ;;  %v848_v37 = vld [vmem:[%s2075_s3 + $0x50] sm:$0xff] }
 0x17d   : > { %1382 = vrot.lane.b32.xlu0 %v1351_v23, %s1481_s16  ;;  %v851_v23 = vld [vmem:[%s2075_s3 + $0x68] sm:$0xff] }
 0x1b6   : > { %v1353_v39 = vpop.permute.xlu2 %1352 }
 0x1b7   : > { %v1355_v48 = vunpack.i.h.bf16 %v1353_v39  ;;  %v1354_v49 = vunpack.i.l.bf16 %v1353_v39  ;;  %v1236_v39 = vld [vmem:[%s2075_s3 + $0x168] sm:$0xff] }
 0x1b9   : > { %v612_v58 = vsel %vm270_vm0, %v1354_v49, %v1355_v48  ;;  %v615_v59 = vsel %vm270_vm0, %v1355_v48, %v1354_v49  ;;  %v1250_v48 = vld [vmem:[%s2075_s3 + $0x1d8] sm:$0xff] }
 0x1ba   : > { %v845_v49 = vld [vmem:[%s2075_s3 + $0x38] sm:$0xff] }
 0x1c7   : > { %v1378_v41 = vpop.permute.xlu2 %1377 }
 0x1c8   : > { %v1380_v50 = vunpack.i.h.bf16 %v1378_v41  ;;  %v1379_v51 = vunpack.i.l.bf16 %v1378_v41  ;;  %v847_v41 = vld [vmem:[%s2075_s3 + $0x48] sm:$0xff] }
 0x1ca   : > { %v721_v60 = vsel %vm423_vm4, %v1379_v51, %v1380_v50  ;;  %v724_v61 = vsel %vm423_vm4, %v1380_v50, %v1379_v51  ;;  %v861_v50 = vld [vmem:[%s2075_s3 + $0xb8] sm:$0xff]  ;;  %v844_v51 = vld [vmem:[%s2075_s3 + $0x30] sm:$0xff] }
 0x1cf   : > { %v1393_v54 = vpop.permute.xlu2 %1392 }
 0x1d0   : > { %v1395_v63 = vunpack.i.h.bf16 %v1393_v54  ;;  %v1394_v0 = vunpack.i.l.bf16 %v1393_v54  ;;  %v859_v54 = vld [vmem:[%s2075_s3 + $0xa8] sm:$0xff] }
 0x1d2   : > { %v719_v13 = vsel %vm423_vm4, %v1394_v0, %v1395_v63  ;;  %v722_v14 = vsel %vm423_vm4, %v1395_v63, %v1394_v0  ;;  %v838_v63 = vld [vmem:[%s2075_s3] sm:$0xff] }
 0x1d3   : > { %v854_v0 = vld [vmem:[%s2075_s3 + $0x80] sm:$0xff] }
 0x1d6   : > { %v1358_v40 = vpop.permute.xlu1 %1357 }
 0x1d7   : > { %v1360_v44 = vunpack.i.h.bf16 %v1358_v40  ;;  %v1359_v45 = vunpack.i.l.bf16 %v1358_v40  ;;  %v1252_v40 = vld [vmem:[%s2075_s3 + $0x1e8] sm:$0xff] }
 0x1d9   : > { %v613_v55 = vsel %vm270_vm0, %v1359_v45, %v1360_v44  ;;  %v616_v56 = vsel %vm270_vm0, %v1360_v44, %v1359_v45  ;;  %v1251_v44 = vld [vmem:[%s2075_s3 + $0x1e0] sm:$0xff] }
 0x1da   : > { %v846_v45 = vld [vmem:[%s2075_s3 + $0x40] sm:$0xff] }
 0x1de   : > { %v1363_v42 = vpop.permute.xlu1 %1362 }
 0x1df   : > { %v1368_v43 = vpop.permute.xlu0 %1367  ;;  %v1365_v4 = vunpack.i.h.bf16 %v1363_v42  ;;  %v1364_v5 = vunpack.i.l.bf16 %v1363_v42  ;;  %v863_v42 = vld [vmem:[%s2075_s3 + $0xc8] sm:$0xff] }
 0x1e0   : > { %v1370_v46 = vunpack.i.h.bf16 %v1368_v43  ;;  %v1369_v47 = vunpack.i.l.bf16 %v1368_v43  ;;  %v1235_v43 = vld [vmem:[%s2075_s3 + $0x160] sm:$0xff] }
 0x1e1   : > { %v785_v17 = vsel %vm513_vm3, %v1364_v5, %v1365_v4  ;;  %v788_v18 = vsel %vm513_vm3, %v1365_v4, %v1364_v5  ;;  %v1285_v4 = vld [vmem:[%s2075_s3 + $0x2f0] sm:$0xff] }
 0x1e2   : > { %v614_v52 = vsel %vm270_vm0, %v1369_v47, %v1370_v46  ;;  %v617_v53 = vsel %vm270_vm0, %v1370_v46, %v1369_v47  ;;  %v862_v46 = vld [vmem:[%s2075_s3 + $0xc0] sm:$0xff]  ;;  %v1234_v47 = vld [vmem:[%s2075_s3 + $0x158] sm:$0xff]  ;;  %v1233_v5 = vld [vmem:[%s2075_s3 + $0x150] sm:$0xff] }
 0x1e3   : > { %635 = vmatpush.msra.mxu0 %v614_v52  ;;  %655 = vmatpush.msra.mxu1 %v617_v53  ;;  %v860_v52 = vld [vmem:[%s2075_s3 + $0xb0] sm:$0xff]  ;;  %v843_v53 = vld [vmem:[%s2075_s3 + $0x28] sm:$0xff] }
 0x1e5   : > { %636 = vmatpush.msra.mxu0 %v613_v55  ;;  %656 = vmatpush.msra.mxu1 %v616_v56  ;;  %v842_v55 = vld [vmem:[%s2075_s3 + $0x20] sm:$0xff] }
 0x1e6   : > { %v1388_v57 = vpop.permute.xlu1 %1387  ;;  %v858_v56 = vld [vmem:[%s2075_s3 + $0xa0] sm:$0xff] }
 0x1e7   : > { %v1390_v1 = vunpack.i.h.bf16 %v1388_v57  ;;  %v1389_v2 = vunpack.i.l.bf16 %v1388_v57  ;;  %v1373_v3 = vpop.permute.xlu0 %1372  ;;  %637 = vmatpush.msra.mxu0 %v612_v58  ;;  %657 = vmatpush.msra.mxu1 %v615_v59  ;;  %v841_v57 = vld [vmem:[%s2075_s3 + $0x18] sm:$0xff]  ;;  %v840_v59 = vld [vmem:[%s2075_s3 + $0x10] sm:$0xff] }
 0x1e8   : > { %v1375_v6 = vunpack.i.h.bf16 %v1373_v3  ;;  %v1374_v7 = vunpack.i.l.bf16 %v1373_v3  ;;  %1213 = vmatmul.msk.f32.vlgmr.msra.gmra.mxu0 %vm618_vm5, %v1212_v62  ;;  %1214 = vmatmul.msk.f32.vlgmr.msra.gmra.mxu1 %vm618_vm5, %v1212_v62  ;;  %v857_v58 = vld [vmem:[%s2075_s3 + $0x98] sm:$0xff]  ;;  %v855_v62 = vld [vmem:[%s2075_s3 + $0x88] sm:$0xff]  ;;  %v1269_v3 = vld [vmem:[%s2075_s3 + $0x270] sm:$0xff] }
 0x1e9   : > { %741 = vmatpush.msrb.mxu0 %v721_v60  ;;  %761 = vmatpush.msrb.mxu1 %v724_v61  ;;  %v720_v8 = vsel %vm423_vm4, %v1389_v2, %v1390_v1  ;;  %v723_v9 = vsel %vm423_vm4, %v1390_v1, %v1389_v2  ;;  %v856_v60 = vld [vmem:[%s2075_s3 + $0x90] sm:$0xff]  ;;  %v839_v61 = vld [vmem:[%s2075_s3 + $0x8] sm:$0xff]  ;;  %v1270_v1 = vld [vmem:[%s2075_s3 + $0x278] sm:$0xff] }
 0x1ea   : > { %v786_v10 = vsel %vm513_vm3, %v1374_v7, %v1375_v6  ;;  %v789_v11 = vsel %vm513_vm3, %v1375_v6, %v1374_v7  ;;  %v1286_v2 = vld [vmem:[%s2075_s3 + $0x2f8] sm:$0xff]  ;;  %v1249_v6 = vld [vmem:[%s2075_s3 + $0x1d0] sm:$0xff]  ;;  %v1268_v7 = vld [vmem:[%s2075_s3 + $0x268] sm:$0xff] }
 0x1eb   : > { %742 = vmatpush.msrb.mxu0 %v720_v8  ;;  %762 = vmatpush.msrb.mxu1 %v723_v9  ;;  %v1284_v8 = vld [vmem:[%s2075_s3 + $0x2e8] sm:$0xff] }
 0x1ec   : > { %806 = vmatpush.msra.mxu2 %v786_v10  ;;  %826 = vmatpush.msra.mxu3 %v789_v11  ;;  %v1232_v9 = vld [vmem:[%s2075_s3 + $0x148] sm:$0xff]  ;;  %v1267_v11 = vld [vmem:[%s2075_s3 + $0x260] sm:$0xff] }
 0x1ed   : > { %743 = vmatpush.msrb.mxu0 %v719_v13  ;;  %763 = vmatpush.msrb.mxu1 %v722_v14  ;;  %v1248_v10 = vld [vmem:[%s2075_s3 + $0x1c8] sm:$0xff]  ;;  %v1283_v13 = vld [vmem:[%s2075_s3 + $0x2e0] sm:$0xff] }
 0x1ee   : > { %807 = vmatpush.msra.mxu2 %v785_v17  ;;  %827 = vmatpush.msra.mxu3 %v788_v18  ;;  %v1231_v14 = vld [vmem:[%s2075_s3 + $0x140] sm:$0xff]  ;;  %v1282_v17 = vld [vmem:[%s2075_s3 + $0x2d8] sm:$0xff] }
 0x1ef   : > { %870 = vmatpush.msra.mxu0 %v853_v15  ;;  %890 = vmatpush.msra.mxu1 %v869_v16  ;;  %v1383_v22 = vpop.permute.xlu0 %1382  ;;  %v1247_v15 = vld [vmem:[%s2075_s3 + $0x1c0] sm:$0xff]  ;;  %v1266_v16 = vld [vmem:[%s2075_s3 + $0x258] sm:$0xff] }
 0x1f0   : > { %v1385_v25 = vunpack.i.h.bf16 %v1383_v22  ;;  %v1384_v26 = vunpack.i.l.bf16 %v1383_v22  ;;  %1218 = vmatmul.msk.f32.vlgmr.msrb.gmra.mxu0 %vm618_vm5, %v1217_v21  ;;  %1219 = vmatmul.msk.f32.vlgmr.msrb.gmra.mxu1 %vm618_vm5, %v1217_v21  ;;  %v1230_v18 = vld [vmem:[%s2075_s3 + $0x138] sm:$0xff]  ;;  %v1281_v21 = vld [vmem:[%s2075_s3 + $0x2d0] sm:$0xff] }
 0x1f1   : > { %871 = vmatpush.msra.mxu0 %v852_v19  ;;  %891 = vmatpush.msra.mxu1 %v868_v20  ;;  %v1246_v19 = vld [vmem:[%s2075_s3 + $0x1b8] sm:$0xff]  ;;  %v1265_v20 = vld [vmem:[%s2075_s3 + $0x250] sm:$0xff] }
 0x1f2   : > { %v784_v28 = vsel %vm513_vm3, %v1384_v26, %v1385_v25  ;;  %v787_v29 = vsel %vm513_vm3, %v1385_v25, %v1384_v26  ;;  %v1229_v22 = vld [vmem:[%s2075_s3 + $0x130] sm:$0xff]  ;;  %v1280_v25 = vld [vmem:[%s2075_s3 + $0x2c8] sm:$0xff] }
 0x1f3   : > { %872 = vmatpush.msra.mxu0 %v851_v23  ;;  %892 = vmatpush.msra.mxu1 %v867_v24  ;;  %v1245_v23 = vld [vmem:[%s2075_s3 + $0x1b0] sm:$0xff]  ;;  %v1264_v24 = vld [vmem:[%s2075_s3 + $0x248] sm:$0xff] }
 0x1f4   : > { %808 = vmatpush.msra.mxu2 %v784_v28  ;;  %828 = vmatpush.msra.mxu3 %v787_v29  ;;  %v1228_v26 = vld [vmem:[%s2075_s3 + $0x128] sm:$0xff]  ;;  %v1263_v28 = vld [vmem:[%s2075_s3 + $0x240] sm:$0xff] }
 0x1f5   : > { %1221 = vmatmul.msk.f32.vlgmr.msra.gmra.mxu2 %vm618_vm5, %v1220_v27  ;;  %1222 = vmatmul.msk.f32.vlgmr.msra.gmra.mxu3 %vm618_vm5, %v1220_v27  ;;  %v1244_v27 = vld [vmem:[%s2075_s3 + $0x1a8] sm:$0xff]  ;;  %v1279_v29 = vld [vmem:[%s2075_s3 + $0x2c0] sm:$0xff] }
 0x1f6   : > { %873 = vmatpush.msra.mxu0 %v850_v30  ;;  %893 = vmatpush.msra.mxu1 %v866_v31  ;;  %v1227_v30 = vld [vmem:[%s2075_s3 + $0x120] sm:$0xff] }
 0x1f7   : > { %950 = vmatpush.msrb.mxu2 %v1238_v32  ;;  %970 = vmatpush.msrb.mxu3 %v1254_v12  ;;  %v1243_v31 = vld [vmem:[%s2075_s3 + $0x1a0] sm:$0xff]  ;;  %v1262_v32 = vld [vmem:[%s2075_s3 + $0x238] sm:$0xff] }
 0x1f8   : > { %874 = vmatpush.msra.mxu0 %v849_v33  ;;  %894 = vmatpush.msra.mxu1 %v865_v34  ;;  %v1278_v12 = vld [vmem:[%s2075_s3 + $0x2b8] sm:$0xff] }
 0x1f9   : > { %951 = vmatpush.msrb.mxu2 %v1237_v35  ;;  %971 = vmatpush.msrb.mxu3 %v1253_v36  ;;  %v1226_v33 = vld [vmem:[%s2075_s3 + $0x118] sm:$0xff]  ;;  %v1261_v35 = vld [vmem:[%s2075_s3 + $0x230] sm:$0xff] }
 0x1fa   : > { %875 = vmatpush.msra.mxu0 %v848_v37  ;;  %895 = vmatpush.msra.mxu1 %v864_v38  ;;  %v1242_v34 = vld [vmem:[%s2075_s3 + $0x198] sm:$0xff]  ;;  %v1277_v36 = vld [vmem:[%s2075_s3 + $0x2b0] sm:$0xff] }
 0x1fb   : > { %952 = vmatpush.msrb.mxu2 %v1236_v39  ;;  %972 = vmatpush.msrb.mxu3 %v1252_v40  ;;  %v1225_v37 = vld [vmem:[%s2075_s3 + $0x110] sm:$0xff]  ;;  %v1260_v39 = vld [vmem:[%s2075_s3 + $0x228] sm:$0xff] }
 0x1fc   : > { %876 = vmatpush.msra.mxu0 %v847_v41  ;;  %896 = vmatpush.msra.mxu1 %v863_v42  ;;  %v1241_v38 = vld [vmem:[%s2075_s3 + $0x190] sm:$0xff]  ;;  %v1276_v40 = vld [vmem:[%s2075_s3 + $0x2a8] sm:$0xff] }
 0x1fd   : > { %953 = vmatpush.msrb.mxu2 %v1235_v43  ;;  %973 = vmatpush.msrb.mxu3 %v1251_v44  ;;  %v1224_v41 = vld [vmem:[%s2075_s3 + $0x108] sm:$0xff]  ;;  %v1259_v43 = vld [vmem:[%s2075_s3 + $0x220] sm:$0xff] }
 0x1fe   : > { %877 = vmatpush.msra.mxu0 %v846_v45  ;;  %897 = vmatpush.msra.mxu1 %v862_v46  ;;  %v1240_v42 = vld [vmem:[%s2075_s3 + $0x188] sm:$0xff]  ;;  %v1275_v44 = vld [vmem:[%s2075_s3 + $0x2a0] sm:$0xff] }
 0x1ff   : > { %954 = vmatpush.msrb.mxu2 %v1234_v47  ;;  %974 = vmatpush.msrb.mxu3 %v1250_v48  ;;  %v1223_v45 = vld [vmem:[%s2075_s3 + $0x100] sm:$0xff]  ;;  %v1258_v47 = vld [vmem:[%s2075_s3 + $0x218] sm:$0xff] }
 0x200   : > { %878 = vmatpush.msra.mxu0 %v845_v49  ;;  %898 = vmatpush.msra.mxu1 %v861_v50  ;;  %v1239_v46 = vld [vmem:[%s2075_s3 + $0x180] sm:$0xff]  ;;  %v1274_v48 = vld [vmem:[%s2075_s3 + $0x298] sm:$0xff]  ;;  %v1257_v49 = vld [vmem:[%s2075_s3 + $0x210] sm:$0xff] }
 0x201   : > { %955 = vmatpush.msrb.mxu2 %v1233_v5  ;;  %975 = vmatpush.msrb.mxu3 %v1249_v6  ;;  %v1273_v50 = vld [vmem:[%s2075_s3 + $0x290] sm:$0xff] }
 0x202   : > { %879 = vmatpush.msra.mxu0 %v844_v51  ;;  %899 = vmatpush.msra.mxu1 %v860_v52  ;;  %v1256_v51 = vld [vmem:[%s2075_s3 + $0x208] sm:$0xff] }
 0x203   : > { %956 = vmatpush.msrb.mxu2 %v1232_v9  ;;  %976 = vmatpush.msrb.mxu3 %v1248_v10  ;;  %v1272_v52 = vld [vmem:[%s2075_s3 + $0x288] sm:$0xff] }
 0x204   : > { %880 = vmatpush.msra.mxu0 %v843_v53  ;;  %900 = vmatpush.msra.mxu1 %v859_v54  ;;  %v1255_v53 = vld [vmem:[%s2075_s3 + $0x200] sm:$0xff] }
 0x205   : > { %957 = vmatpush.msrb.mxu2 %v1231_v14  ;;  %977 = vmatpush.msrb.mxu3 %v1247_v15  ;;  %v1271_v54 = vld [vmem:[%s2075_s3 + $0x280] sm:$0xff] }
 0x206   : > { %881 = vmatpush.msra.mxu0 %v842_v55  ;;  %901 = vmatpush.msra.mxu1 %v858_v56  ;;  %v837_v15 = vld [vmem:[%s2076_s4] sm:$0x1] }
 0x207   : > { %958 = vmatpush.msrb.mxu2 %v1230_v18  ;;  %978 = vmatpush.msrb.mxu3 %v1246_v19 }
 0x208   : > { %882 = vmatpush.msra.mxu0 %v841_v57  ;;  %902 = vmatpush.msra.mxu1 %v857_v58  ;;  %v682_v57 = vpop.f32.mrf.mxu2  ;;  %v702_v58 = vpop.f32.mrf.mxu3 }
 0x209   : > { %959 = vmatpush.msrb.mxu2 %v1229_v22  ;;  %979 = vmatpush.msrb.mxu3 %v1245_v23 }
 0x20a   : > { %883 = vmatpush.msra.mxu0 %v840_v59  ;;  %903 = vmatpush.msra.mxu1 %v856_v60 }
 0x20b   : > { %960 = vmatpush.msrb.mxu2 %v1228_v26  ;;  %980 = vmatpush.msrb.mxu3 %v1244_v27 }
 0x20c   : > { %884 = vmatpush.msra.mxu0 %v839_v61  ;;  %904 = vmatpush.msra.mxu1 %v855_v62 }
 0x20d   : > { %961 = vmatpush.msrb.mxu2 %v1227_v30  ;;  %981 = vmatpush.msrb.mxu3 %v1243_v31 }
 0x20e   : > { %885 = vmatpush.msra.mxu0 %v838_v63  ;;  %905 = vmatpush.msra.mxu1 %v854_v0 }
 0x20f   : > { %962 = vmatpush.msrb.mxu2 %v1226_v33  ;;  %982 = vmatpush.msrb.mxu3 %v1242_v34 }
 0x210   : > { %1028 = vmatpush.msrb.mxu0 %v1270_v1  ;;  %1048 = vmatpush.msrb.mxu1 %v1286_v2 }
 0x211   : > { %963 = vmatpush.msrb.mxu2 %v1225_v37  ;;  %983 = vmatpush.msrb.mxu3 %v1241_v38 }
 0x212   : > { %1029 = vmatpush.msrb.mxu0 %v1269_v3  ;;  %1049 = vmatpush.msrb.mxu1 %v1285_v4 }
 0x213   : > { %964 = vmatpush.msrb.mxu2 %v1224_v41  ;;  %984 = vmatpush.msrb.mxu3 %v1240_v42 }
 0x214   : > { %1030 = vmatpush.msrb.mxu0 %v1268_v7  ;;  %1050 = vmatpush.msrb.mxu1 %v1284_v8 }
 0x215   : > { %965 = vmatpush.msrb.mxu2 %v1223_v45  ;;  %985 = vmatpush.msrb.mxu3 %v1239_v46 }
 0x216   : > { %1031 = vmatpush.msrb.mxu0 %v1267_v11  ;;  %1051 = vmatpush.msrb.mxu1 %v1283_v13 }
 0x218   : > { %1032 = vmatpush.msrb.mxu0 %v1266_v16  ;;  %1052 = vmatpush.msrb.mxu1 %v1282_v17 }
 0x21a   : > { %1033 = vmatpush.msrb.mxu0 %v1265_v20  ;;  %1053 = vmatpush.msrb.mxu1 %v1281_v21 }
 0x21c   : > { %1034 = vmatpush.msrb.mxu0 %v1264_v24  ;;  %1054 = vmatpush.msrb.mxu1 %v1280_v25 }
 0x21e   : > { %1035 = vmatpush.msrb.mxu0 %v1263_v28  ;;  %1055 = vmatpush.msrb.mxu1 %v1279_v29 }
 0x220   : > { %1036 = vmatpush.msrb.mxu0 %v1262_v32  ;;  %1056 = vmatpush.msrb.mxu1 %v1278_v12 }
 0x222   : > { %1037 = vmatpush.msrb.mxu0 %v1261_v35  ;;  %1057 = vmatpush.msrb.mxu1 %v1277_v36 }
 0x224   : > { %1038 = vmatpush.msrb.mxu0 %v1260_v39  ;;  %1058 = vmatpush.msrb.mxu1 %v1276_v40 }
 0x226   : > { %1039 = vmatpush.msrb.mxu0 %v1259_v43  ;;  %1059 = vmatpush.msrb.mxu1 %v1275_v44 }
 0x228   : > { %1040 = vmatpush.msrb.mxu0 %v1258_v47  ;;  %1060 = vmatpush.msrb.mxu1 %v1274_v48 }
 0x22a   : > { %1041 = vmatpush.msrb.mxu0 %v1257_v49  ;;  %1061 = vmatpush.msrb.mxu1 %v1273_v50 }
 0x22c   : > { %1042 = vmatpush.msrb.mxu0 %v1256_v51  ;;  %1062 = vmatpush.msrb.mxu1 %v1272_v52 }
 0x22e   : > { %1043 = vmatpush.msrb.mxu0 %v1255_v53  ;;  %1063 = vmatpush.msrb.mxu1 %v1271_v54 }
 0x265   : > { %v639_v55 = vpop.f32.mrf.mxu0  ;;  %v659_v56 = vpop.f32.mrf.mxu1 }
 0x266   : > { %v683_v59 = vadd.f32 %v682_v57, %v639_v55  ;;  %v703_v60 = vadd.f32 %v702_v58, %v659_v56 }
 0x26d   : > { %v745_v61 = vpop.f32.mrf.mxu0  ;;  %v765_v62 = vpop.f32.mrf.mxu1 }
 0x26e   : > { %v768_v63 = vadd.f32 %v745_v61, %v683_v59  ;;  %v769_v0 = vadd.f32 %v765_v62, %v703_v60 }
 0x278   : > { %v810_v1 = vpop.f32.mrf.mxu2  ;;  %v830_v2 = vpop.f32.mrf.mxu3 }
 0x279   : > { %v833_v3 = vadd.f32 %v810_v1, %v768_v63  ;;  %v834_v4 = vadd.f32 %v830_v2, %v769_v0 }
 0x27b   : > { %1408 = vtanh.f32 %v833_v3 }
 0x27c   : > { %1410 = vtanh.f32 %v834_v4 }
 0x281   : > { %v1409_v5 = vpop.eup %1408 }
 0x282   : > { %v1411_v6 = vpop.eup %1410  ;;  %886 = vmatmul.f32.vlgmr.msra.gmra.mxu0 %v1409_v5  ;;  %v946_v7 = vrot.slane %v1409_v5, 1  ;;  %v1024_v9 = vrot.slane %v1409_v5, 2 }
 0x283   : > { %906 = vmatmul.f32.vlgmr.msra.gmra.mxu1 %v1411_v6  ;;  %v947_v8 = vrot.slane %v1411_v6, 1  ;;  %v1025_v10 = vrot.slane %v1411_v6, 2 }
 0x284   : > { %966 = vmatmul.f32.vlgmr.msrb.gmra.mxu2 %v946_v7 }
 0x285   : > { %986 = vmatmul.f32.vlgmr.msrb.gmra.mxu3 %v947_v8 }
 0x28a   : > { %1044 = vmatmul.f32.vlgmr.msrb.gmra.mxu0 %v1024_v9 }
 0x28b   : > { %1064 = vmatmul.f32.vlgmr.msrb.gmra.mxu1 %v1025_v10 }
 0x2ff   : > { %v887_v11 = vpop.f32.mrf.mxu0 }
 0x300   : > { %v907_v13 = vpop.f32.mrf.mxu1 }
 0x301   : > { %v908_v14 = vadd.f32 %v907_v13, %v887_v11 }
 0x303   : > { %v910_v20 = vadd.f32 %v908_v14, %v837_v15 }
 0x307   : > { %v967_v16 = vpop.f32.mrf.mxu2  ;;  %v1045_v17 = vpop.f32.mrf.mxu0 }
 0x308   : > { %v987_v18 = vpop.f32.mrf.mxu3  ;;  %v1065_v19 = vpop.f32.mrf.mxu1 }
 0x309   : > { %v988_v21 = vadd.f32 %v987_v18, %v967_v16  ;;  %v1066_v23 = vadd.f32 %v1065_v19, %v1045_v17 }
 0x30b   : > { %v990_v22 = vadd.f32 %v988_v21, %v910_v20 }
 0x30d   : > { %v1068_v24 = vadd.f32 %v1066_v23, %v990_v22 }
 0x30f   : > { %v1069_v25 = vsub.f32 0.0, %v1068_v24 }
 0x311   : > { %v1070_v26 = vmul.f32 1.442695, %v1069_v25 }
 0x313   : > { %1412 = vpow2.f32 %v1070_v26 }
 0x319   : > { %v1413_v27 = vpop.eup %1412 }
 0x31a   : > { %v1072_v28 = vadd.f32 1.0, %v1413_v27 }
 0x31c   : > { %1414 = vrcp.f32 %v1072_v28  ;;  %v1084_v32 = vand.u32 2147483648, %v1072_v28  ;;  %v1082_v33 = vand.u32 2147483647, %v1072_v28  ;;  %vm1078_vm7 = vweird.f32 %v1072_v28 }
 0x31e   : > { %v1085_v35 = vor.u32 1.1754944e-38, %v1084_v32  ;;  %vm1083_vm9 = vcmp.eq.f32.partialorder %v1082_v33, 8.507059e+37 }
 0x322   : > { %v1415_v29 = vpop.eup %1414 }
 0x323   : > { %v1074_v30 = vmul.f32 %v1415_v29, %v1072_v28  ;;  %vm1079_vm6 = vweird.f32 %v1415_v29 }
 0x324   : > { %vm1080_vm8 = vmor %vm1078_vm7, %vm1079_vm6 }
 0x325   : > { %v1075_v31 = vsub.f32 1.0, %v1074_v30 }
 0x327   : > { %v1076_v12 = vmul.f32 %v1415_v29, %v1075_v31 }
 0x329   : > { %v1077_v34 = vadd.f32 %v1415_v29, %v1076_v12 }
 0x32b   : > { %v1081_v36 = vsel %vm1080_vm8, %v1415_v29, %v1077_v34 }
 0x32c   : > { %v1086_v37 = vsel %vm1083_vm9, %v1085_v35, %v1081_v36 }
 0x32d   : > { %1088 = vst [vmem:[%s247_s9] sm:$0x1] %v1086_v37 }
 0x32e   : > { %1443 = shalt.err (!%p1440_p5)
}
 0x32f   : > { %1294 = dma.vmem_to_hbm [thread:$0]  (%p1551_p6), %s1101_s10, 16, %s1103_s11, %s1090_s22  }
 0x330 PF: > { %s1114_s12 = sand.u32 1, %s1466_s18   ;;  %p1297_p7 = pnand %p1165_p9, %p1555_p8 }
 0x331   : > { %s1115_s26 = scalar_lea.sflag [#allocation4], %s1114_s12 }
 0x332   : > { %p1298_p10 = pneg %p1297_p7 }
 0x334   : > { %1461 = dma.done.wait (%p1298_p10), %s1115_s26, 16  }
 0x335   : > { %1463 = vsyncadd (%p1298_p10), %s1115_s26, 4294967280  ;;  %p15_p11 = scmp.ge.s32.totalorder %s1536_s24, 4   ;;  %s2080_s18 = smov %s1470_s19 }
 0x336   : > { %s2081_s19 = smov %s1474_s20  ;;  %s2082_s20 = smov %s1549_s27 }
 0x337   : > { %s2083_s21 = smov %s1536_s24  ;;  %17 = sbr.rel (!%p15_p11) target bundleno = 3 (0x3), region = 111 }
 0x33c   :  { %1120 = vsyncpa [#allocation4], 1 }
 0x33d   :  { %1122 = vsyncpa [#allocation4 + $0x1], 1 }

</bundles_post_ra>
